<compile_context>
chip_gen: v7x
topology: tpu7x:2x2x1
jax: 0.10.0
libtpu: 0.0.40
codegen_flags: <defaults>
</compile_context>

<pallas_src>
import functools

import jax
import jax.numpy as jnp
from jax.experimental import pallas as pl
from jax.experimental.pallas import tpu as pltpu


def _gated_attention_kernel(z_ref, wqkvg_ref, bqkvg_ref,
                            pooled_ref, attn_ref,
                            *, block_b, seq_len, hidden_size, flatten_attn):
    bb, S, H = block_b, seq_len, hidden_size

    # Fused QKVG projection: one MXU matmul with M = bb*S rows, N = 4H columns.
    z = z_ref[...]                                                    # (bb*S, D)
    qkvg = jnp.dot(z, wqkvg_ref[...],
                   preferred_element_type=jnp.float32) + bqkvg_ref[...]

    # Lane slices at multiples of 128 (H = 128); the row split back into
    # (bb, S, H) stays a view as long as S is a multiple of 8.
    q = qkvg[:, 0 * H:1 * H].reshape(bb, S, H)   # 1/sqrt(H) folded into Wq/bq
    k = qkvg[:, 1 * H:2 * H].reshape(bb, S, H)
    v = qkvg[:, 2 * H:3 * H].reshape(bb, S, H)
    g = qkvg[:, 3 * H:4 * H].reshape(bb, S, H)

    # Scores: batched contraction on the last dims (no XLU transpose of k).
    scores = jnp.einsum("bsh,bth->bst", q, k,
                        preferred_element_type=jnp.float32)          # (bb, S, S)

    # Numerically stable softmax along the key axis.
    scores = scores - scores.max(axis=-1, keepdims=True)
    p = jnp.exp(scores)
    # approx=True would move the reciprocal to the EUP slot, but may miss the
    # 1e-4 test tolerance; keep the exact reciprocal.
    attn = p * pl.reciprocal(p.sum(axis=-1, keepdims=True))          # (bb, S, S)

    # Sigmoid gate and gated values.
    gated_value = v * jax.nn.sigmoid(g)                              # (bb, S, H)

    # Algebraic sum-pool: sum_s (attn @ gv) == (sum_s attn) . gv.  The value
    # contraction drops from O(bb*S*S*H) to O(bb*S*H) flops and the (bb, S, H)
    # ctx intermediate disappears.  Implemented as a lane broadcast + VPU mul +
    # sublane reduction (robust lowering; same flops as the matvec form).
    colsum = attn.sum(axis=1)                                        # (bb, S)
    pooled = (colsum[:, :, None] * gated_value).sum(axis=1)          # (bb, H)

    pooled_ref[...] = pooled[None].astype(pooled_ref.dtype)          # (1, bb, H)
    if flatten_attn:
        # Lane-dense slab for small S: S*S lanes per row instead of S.
        attn_ref[...] = attn.reshape(1, bb, S * S).astype(attn_ref.dtype)
    else:
        attn_ref[...] = attn.astype(attn_ref.dtype)                  # (bb, S, S)


def gated_attention(z, params, hidden_size, *, block_b=None):
    """z: (B, S, D) float32. Returns (output (B, D), attention_weights (B, S, S))."""
    B, S, D = z.shape
    H = hidden_size
    wq, bq, wk, bk, wv, bv, wg, bg, wf, bf = params

    # Fold the 1/sqrt(H) score scale into the query projection (free), then
    # fuse QKVG into a single (D, 4H) weight / (1, 4H) bias.
    scale = 1.0 / (float(H) ** 0.5)
    wqkvg = jnp.concatenate([wq * scale, wk, wv, wg], axis=1)        # (D, 4H)
    bqkvg = jnp.concatenate([bq * scale, bk, bv, bg], axis=1)        # (1, 4H)

    if block_b is None:
        # >= 2 grid steps when B allows: feeds v7x's second TensorCore on the
        # "parallel" axis and lets BlockSpec double-buffering hide the z read
        # and the attn writeback behind compute. On 1-TC chips the extra step
        # costs ~0.35 us — noise at these sizes.
        block_b = B // 2 if (B % 2 == 0 and B >= 2) else B
    assert B % block_b == 0
    num_blocks = B // block_b
    # (8, 128) tiling rule for the z row block (block_b*S, D).
    assert (block_b * S) % 8 == 0 or num_blocks == 1, (
        "block_b * S must be a multiple of 8 (or use a single batch block)")

    # Attention-weight layout: lane-dense slab when S is not a multiple of 128
    # (avoids masked partial stores); otherwise (bb, S, S) is already dense.
    flatten_attn = (S % 128) != 0

    # Flatten the batch into the matmul M dimension for the fused projection.
    z_flat = z.reshape(B * S, D)

    kernel = functools.partial(_gated_attention_kernel, block_b=block_b,
                               seq_len=S, hidden_size=H,
                               flatten_attn=flatten_attn)

    if flatten_attn:
        attn_shape = jax.ShapeDtypeStruct((num_blocks, block_b, S * S), z.dtype)
        attn_spec = pl.BlockSpec((1, block_b, S * S), lambda i: (i, 0, 0))
    else:
        attn_shape = jax.ShapeDtypeStruct((B, S, S), z.dtype)
        attn_spec = pl.BlockSpec((block_b, S, S), lambda i: (i, 0, 0))

    # TODO(synk): for production S (>= a few K) the (S, S) softmax should be
    # tiled flash-style over an "arbitrary" KV grid axis with running max/sum
    # scratch so the live SxS intermediates fit v7x's 64 MiB VMEM.
    pooled, attn = pl.pallas_call(
        kernel,
        out_shape=(
            jax.ShapeDtypeStruct((num_blocks, block_b, H), jnp.float32),
            attn_shape,
        ),
        grid_spec=pltpu.PrefetchScalarGridSpec(
            num_scalar_prefetch=0,
            grid=(num_blocks,),
            in_specs=[
                pl.BlockSpec((block_b * S, D), lambda i: (i, 0)),    # z rows
                # Weight/bias index maps are constant; pl.Buffered(1) single
                # buffering would save VMEM at large D (negligible at D=32).
                pl.BlockSpec((D, 4 * H), lambda i: (0, 0)),          # fused Wqkvg
                pl.BlockSpec((1, 4 * H), lambda i: (0, 0)),          # fused bias
            ],
            out_specs=[
                pl.BlockSpec((1, block_b, H), lambda i: (i, 0, 0)),  # pooled
                attn_spec,                                           # attention
            ],
        ),
        compiler_params=pltpu.CompilerParams(
            dimension_semantics=("parallel",),
            # Explicit scoped-VMEM limit: v5e defaults to 16 MiB, v6e/v7x to
            # 32 MiB; 64 MiB fits every generation's physical VMEM.
            vmem_limit_bytes=64 * 1024 * 1024),
    )(z_flat, wqkvg, bqkvg)

    pooled = pooled.reshape(B, H)
    attn = attn.reshape(B, S, S)
    # Final (H, D) projection once over the whole batch (lane-dense XLA matmul).
    output = (pooled @ wf + bf).astype(z.dtype)                      # (B, D)
    return output, attn


def init_params(key, in_size, hidden_size):
    """Deterministic synthetic parameters (stored as (in, out))."""
    ks = jax.random.split(key, 10)
    D, H = in_size, hidden_size
    scale_d = 1.0 / (D ** 0.5)
    scale_h = 1.0 / (H ** 0.5)
    wq = jax.random.uniform(ks[0], (D, H), jnp.float32, -scale_d, scale_d)
    bq = jax.random.uniform(ks[1], (1, H), jnp.float32, -scale_d, scale_d)
    wk = jax.random.uniform(ks[2], (D, H), jnp.float32, -scale_d, scale_d)
    bk = jax.random.uniform(ks[3], (1, H), jnp.float32, -scale_d, scale_d)
    wv = jax.random.uniform(ks[4], (D, H), jnp.float32, -scale_d, scale_d)
    bv = jax.random.uniform(ks[5], (1, H), jnp.float32, -scale_d, scale_d)
    wg = jax.random.uniform(ks[6], (D, H), jnp.float32, -scale_d, scale_d)
    bg = jax.random.uniform(ks[7], (1, H), jnp.float32, -scale_d, scale_d)
    wf = jax.random.uniform(ks[8], (H, D), jnp.float32, -scale_h, scale_h)
    bf = jax.random.uniform(ks[9], (1, D), jnp.float32, -scale_h, scale_h)
    return (wq, bq, wk, bk, wv, bv, wg, bg, wf, bf)


def reference(z, params, hidden_size):
    wq, bq, wk, bk, wv, bv, wg, bg, wf, bf = params
    q = z @ wq + bq
    k = z @ wk + bk
    v = z @ wv + bv
    scores = jnp.einsum("bsh,bth->bst", q, k) / (hidden_size ** 0.5)
    attn = jax.nn.softmax(scores, axis=-1)
    gate = jax.nn.sigmoid(z @ wg + bg)
    ctx = jnp.einsum("bst,bth->bsh", attn, v * gate)
    out = ctx.sum(axis=1) @ wf + bf
    return out, attn


if __name__ == "__main__":
    B, S, D, H = 2, 8, 32, 128   # batch, seq, in_size, hidden_size

    key = jax.random.PRNGKey(0)
    kz, kp = jax.random.split(key)
    z = jax.random.normal(kz, (B, S, D), dtype=jnp.float32)
    params = init_params(kp, D, H)

    out, attn = gated_attention(z, params, H)
    jax.block_until_ready((out, attn))

    ref_out, ref_attn = reference(z, params, H)
    assert out.shape == (B, D) and attn.shape == (B, S, S)
    assert jnp.allclose(out, ref_out, atol=1e-4, rtol=1e-4)
    assert jnp.allclose(attn, ref_attn, atol=1e-4, rtol=1e-4)

    print("KERNEL_OK")
</pallas_src>

<mosaic_0001>
module attributes {stable_mosaic.version = 11 : i64} {
  func.func @_gated_attention_kernel(%arg0: i32, %arg1: memref<8x32xf32, #tpu.memory_space<vmem>>, %arg2: memref<32x512xf32, #tpu.memory_space<vmem>>, %arg3: memref<1x512xf32, #tpu.memory_space<vmem>>, %arg4: memref<1x1x128xf32, #tpu.memory_space<vmem>>, %arg5: memref<1x1x64xf32, #tpu.memory_space<vmem>>) attributes {dimension_semantics = [#tpu.dimension_semantics<parallel>], iteration_bounds = array<i64: 2>, scalar_prefetch = 0 : i64, scratch_operands = 0 : i64, tpu.core_type = #tpu.core_type<tc>, window_params = [{transform_indices = @transform_0, window_bounds = array<i64: 8, 32>}, {pipeline_mode = #tpu.pipeline_mode<synchronous>, transform_indices = @transform_1, window_bounds = array<i64: 32, 512>}, {pipeline_mode = #tpu.pipeline_mode<synchronous>, transform_indices = @transform_2, window_bounds = array<i64: 1, 512>}, {transform_indices = @transform_3, window_bounds = array<i64: 1, 1, 128>}, {transform_indices = @transform_4, window_bounds = array<i64: 1, 1, 64>}]} {
    %c0 = arith.constant 0 : index
    %c0_0 = arith.constant 0 : index
    %0 = vector.load %arg1[%c0, %c0_0] : memref<8x32xf32, #tpu.memory_space<vmem>>, vector<8x32xf32>
    %c0_1 = arith.constant 0 : index
    %c0_2 = arith.constant 0 : index
    %1 = vector.load %arg2[%c0_1, %c0_2] : memref<32x512xf32, #tpu.memory_space<vmem>>, vector<32x512xf32>
    %cst = arith.constant dense<0.000000e+00> : vector<8x512xf32>
    %2 = tpu.matmul %0, %1, %cst {dimension_numbers = #tpu.dot_dimension_numbers<[1], [0], [0], [1], [0, 0, 1, 1], [], []>} : vector<8x32xf32>, vector<32x512xf32>, vector<8x512xf32> -> vector<8x512xf32>
    %c0_3 = arith.constant 0 : index
    %c0_4 = arith.constant 0 : index
    %3 = vector.load %arg3[%c0_3, %c0_4] : memref<1x512xf32, #tpu.memory_space<vmem>>, vector<1x512xf32>
    %4 = vector.broadcast %3 : vector<1x512xf32> to vector<8x512xf32>
    %5 = arith.addf %2, %4 : vector<8x512xf32>
    %6 = vector.extract_strided_slice %5 {offsets = [0, 0], sizes = [8, 128], strides = [1, 1]} : vector<8x512xf32> to vector<8x128xf32>
    %7 = vector.shape_cast %6 : vector<8x128xf32> to vector<1x8x128xf32>
    %8 = vector.extract_strided_slice %5 {offsets = [0, 128], sizes = [8, 128], strides = [1, 1]} : vector<8x512xf32> to vector<8x128xf32>
    %9 = vector.shape_cast %8 : vector<8x128xf32> to vector<1x8x128xf32>
    %10 = vector.extract_strided_slice %5 {offsets = [0, 256], sizes = [8, 128], strides = [1, 1]} : vector<8x512xf32> to vector<8x128xf32>
    %11 = vector.shape_cast %10 : vector<8x128xf32> to vector<1x8x128xf32>
    %12 = vector.extract_strided_slice %5 {offsets = [0, 384], sizes = [8, 128], strides = [1, 1]} : vector<8x512xf32> to vector<8x128xf32>
    %13 = vector.shape_cast %12 : vector<8x128xf32> to vector<1x8x128xf32>
    "tpu.trace_start"() <{level = 10 : i32, message = "bsh,bth->bst"}> : () -> ()
    %cst_5 = arith.constant dense<0.000000e+00> : vector<1x8x8xf32>
    %14 = tpu.matmul %7, %9, %cst_5 {dimension_numbers = #tpu.dot_dimension_numbers<[2], [2], [1], [1], [0, 0, 0, 1, 1, 1], [0], [0]>} : vector<1x8x128xf32>, vector<1x8x128xf32>, vector<1x8x8xf32> -> vector<1x8x8xf32>
    "tpu.trace_stop"() : () -> ()
    %cst_6 = arith.constant dense<0xFF800000> : vector<1x8xf32>
    %15 = vector.multi_reduction <maximumf>, %14, %cst_6 [2] : vector<1x8x8xf32> to vector<1x8xf32>
    %16 = vector.shape_cast %15 : vector<1x8xf32> to vector<1x8x1xf32>
    %17 = vector.broadcast %16 : vector<1x8x1xf32> to vector<1x8x8xf32>
    %18 = arith.subf %14, %17 : vector<1x8x8xf32>
    %19 = math.exp %18 : vector<1x8x8xf32>
    %cst_7 = arith.constant dense<0.000000e+00> : vector<1x8xf32>
    %20 = vector.multi_reduction <add>, %19, %cst_7 [2] : vector<1x8x8xf32> to vector<1x8xf32>
    %21 = vector.shape_cast %20 : vector<1x8xf32> to vector<1x8x1xf32>
    %22 = tpu.reciprocal %21 : vector<1x8x1xf32> -> vector<1x8x1xf32>
    %23 = vector.broadcast %22 : vector<1x8x1xf32> to vector<1x8x8xf32>
    %24 = arith.mulf %19, %23 : vector<1x8x8xf32>
    %25 = arith.negf %13 : vector<1x8x128xf32>
    %26 = math.exp %25 : vector<1x8x128xf32>
    %cst_8 = arith.constant 1.000000e+00 : f32
    %27 = vector.broadcast %cst_8 : f32 to vector<1x8x128xf32>
    %28 = arith.addf %27, %26 : vector<1x8x128xf32>
    %29 = arith.divf %27, %28 : vector<1x8x128xf32>
    %30 = arith.mulf %11, %29 : vector<1x8x128xf32>
    %cst_9 = arith.constant dense<0.000000e+00> : vector<1x8xf32>
    %31 = vector.multi_reduction <add>, %24, %cst_9 [1] : vector<1x8x8xf32> to vector<1x8xf32>
    %32 = vector.shape_cast %31 : vector<1x8xf32> to vector<1x8x1xf32>
    %33 = vector.broadcast %32 : vector<1x8x1xf32> to vector<1x8x128xf32>
    %34 = arith.mulf %33, %30 : vector<1x8x128xf32>
    %cst_10 = arith.constant dense<0.000000e+00> : vector<1x128xf32>
    %35 = vector.multi_reduction <add>, %34, %cst_10 [1] : vector<1x8x128xf32> to vector<1x128xf32>
    %36 = vector.shape_cast %35 : vector<1x128xf32> to vector<1x1x128xf32>
    %c0_11 = arith.constant 0 : index
    %c0_12 = arith.constant 0 : index
    %c0_13 = arith.constant 0 : index
    %37 = vector.load %arg4[%c0_11, %c0_12, %c0_13] : memref<1x1x128xf32, #tpu.memory_space<vmem>>, vector<1x1x128xf32>
    tpu.vector_store %arg4[%c0_11, %c0_12, %c0_13], %36 {strides = array<i32>} : memref<1x1x128xf32, #tpu.memory_space<vmem>>, vector<1x1x128xf32>,
    %38 = vector.shape_cast %24 : vector<1x8x8xf32> to vector<1x1x64xf32>
    %c0_14 = arith.constant 0 : index
    %c0_15 = arith.constant 0 : index
    %c0_16 = arith.constant 0 : index
    %39 = vector.load %arg5[%c0_14, %c0_15, %c0_16] : memref<1x1x64xf32, #tpu.memory_space<vmem>>, vector<1x1x64xf32>
    tpu.vector_store %arg5[%c0_14, %c0_15, %c0_16], %38 {strides = array<i32>} : memref<1x1x64xf32, #tpu.memory_space<vmem>>, vector<1x1x64xf32>,
    return
  }
  func.func @transform_0(%arg0: i32) -> (i32, i32) {
    %c0_i32 = arith.constant 0 : i32
    %c0_i32_0 = arith.constant 0 : i32
    return %arg0, %c0_i32 : i32, i32
  }
  func.func @transform_1(%arg0: i32) -> (i32, i32) {
    %c0_i32 = arith.constant 0 : i32
    %c0_i32_0 = arith.constant 0 : i32
    %c0_i32_1 = arith.constant 0 : i32
    return %c0_i32, %c0_i32_0 : i32, i32
  }
  func.func @transform_2(%arg0: i32) -> (i32, i32) {
    %c0_i32 = arith.constant 0 : i32
    %c0_i32_0 = arith.constant 0 : i32
    %c0_i32_1 = arith.constant 0 : i32
    return %c0_i32, %c0_i32_0 : i32, i32
  }
  func.func @transform_3(%arg0: i32) -> (i32, i32, i32) {
    %c0_i32 = arith.constant 0 : i32
    %c0_i32_0 = arith.constant 0 : i32
    %c0_i32_1 = arith.constant 0 : i32
    return %arg0, %c0_i32, %c0_i32_0 : i32, i32, i32
  }
  func.func @transform_4(%arg0: i32) -> (i32, i32, i32) {
    %c0_i32 = arith.constant 0 : i32
    %c0_i32_0 = arith.constant 0 : i32
    %c0_i32_1 = arith.constant 0 : i32
    return %arg0, %c0_i32, %c0_i32_0 : i32, i32, i32
  }
}

</mosaic_0001>

<bundles_post_ra>
// kernel: tpu_custom_call.1
= control target key start
LH: loop header
LB: loop body
LE: loop exit
PB: predicated region body
PF: predicated region fallthrough
CT: control target
= control target key end

     0   :  { %10 = vsyncpa [#allocation3], 0  ;;  %s1434_s0 = inlined_call_operand.hbm [shape: f32[16,32], index: 0, kind: input, shape index: {}]   ;;  %s1435_s1 = inlined_call_operand.hbm [shape: f32[32,512], index: 1, kind: input, shape index: {}]   ;;  %s1436_s2 = inlined_call_operand.hbm [shape: f32[1,512], index: 2, kind: input, shape index: {}]   ;;  %s1437_s3 = inlined_call_operand.hbm [shape: f32[2,1,128], index: 3, kind: output, shape index: {0}]   ;;  %s1438_s4 = inlined_call_operand.hbm [shape: f32[2,1,64], index: 4, kind: output, shape index: {1}]  }
   0x1   :  { %12 = vsyncpa [#allocation3 + $0x1], 0 }
   0x2   :  { %13 = vsyncpa [#allocation6], 0 }
   0x3   :  { %14 = vsyncpa [#allocation4], 0 }
   0x4   :  { %16 = vsyncpa [#allocation4 + $0x1], 0 }
   0x5   :  { %17 = vsyncpa [#allocation10], 0 }
   0x6   :  { %19 = vsyncpa [#allocation10 + $0x1], 0  ;;  %s1142_s15 = smov 0   ;;  %s1144_s16 = smov 0  }
   0x7   :  { %s1146_s17 = smov 0   ;;  %s1148_s18 = smov 0  }
   0x8 LB: > { %s1163_s19 = sadd.s32 4294967295, %s1097_s18   ;;  %s775_s20 = sadd.s32 4294967294, %s1097_s18   ;;  %s1097_s18 = sphi %s1148_s18, %s1458_s18   ;;  %s1093_s17 = sphi %s1146_s17, %s1457_s17   ;;  %s1089_s16 = sphi %s1144_s16, %s1456_s16   ;;  %s1085_s15 = sphi %s1142_s15, %s1455_s15  }
   0x9   : > { %p45_p0 = scmp.ne.s32.totalorder %s1089_s16, %s1085_s15  ;;  %p1439_p1 = scmp.eq.s32.totalorder %s1163_s19, 0 }
   0xa   : > { %p117_p3 = scmp.eq.s32.totalorder %s775_s20, 1  ;;  %p776_p5 = scmp.ge.s32.totalorder %s1097_s18, 1 }
   0xb   : > { %p1172_p4 = por %p1439_p1, %p45_p0  ;;  %p150_p7 = scmp.lt.s32.totalorder %s1097_s18, 3 }
   0xc   : > { %p1177_p6 = por %p117_p3, %p45_p0  ;;  %s1099_s24 = smov [#allocation5]  }
   0xd   : > { %s1442_s21 = scalar_select %p1172_p4, 1, 0 }
   0xe   : > { %s1443_s22 = scalar_select %p1177_p6, 1, 0 }
   0xf   : > { %p1182_p8 = pnand %p776_p5, %p150_p7  ;;  %s162_s25 = sshll.u32 %s1099_s24, 4  ;;  %s1186_s25 = int_to_ptr.vmem [resolvable:$true] %s162_s25 }
  0x10   : > { %s1100_s27 = smov [#allocation7]   ;;  %s909_s5 = scalar_lea.hbm %s1435_s1, 2048 }
  0x11   : > { %p830_p9 = pneg %p1182_p8  ;;  %s176_s28 = sshll.u32 %s1100_s27, 4  ;;  %s1197_s28 = int_to_ptr.vmem [resolvable:$true] %s176_s28 }
  0x12   : > { %p910_p12 = scmp.ne.s32.totalorder %s1435_s1, %s909_s5  ;;  %p916_p5 = scmp.lt.u32.totalorder %s909_s5, %s1435_s1 }
  0x13   : > { %p1193_p11 = pnand %p830_p9, %p1439_p1 }
  0x15   : > { %p911_p13 = pneg %p1193_p11 }
  0x17   : > { %p912_p0 = pnand %p911_p13, %p910_p12 }
  0x19   : > { %p913_p3 = pneg %p912_p0 }
  0x1b   : > { %p918_p7 = pnand %p916_p5, %p913_p3 }
  0x1d   : > { %921 = shalt.err (!%p918_p7)
}
  0x1e   : > { %s922_s10 = scalar_lea.vmem %s1186_s25, 2048  ;;  %p930_p2 = scmp.lt.s32.totalorder %s1186_s25, %s1186_s25 }
  0x1f   : > { %p923_p9 = scmp.ne.s32.totalorder %s1186_s25, %s922_s10  ;;  %p931_p12 = scmp.lt.s32.totalorder %s922_s10, %s922_s10 }
  0x21   : > { %p925_p10 = pnand %p923_p9, %p911_p13  ;;  %p932_p0 = por %p931_p12, %p930_p2 }
  0x23   : > { %p926_p1 = pneg %p925_p10 }
  0x25   : > { %p933_p6 = pnand %p932_p0, %p926_p1 }
  0x27   : > { %936 = shalt.err (!%p933_p6)
}
  0x28   : > { %s1101_s11 = smov 512   ;;  %s1102_s12 = smov 32  }
  0x29   : > { %833 = dma.hbm_to_vmem [thread:$0]  (!%p1193_p11), %s1435_s1, 2048, %s1186_s25, [#allocation6], %s1101_s11, %s1101_s11, %s1102_s12  }
  0x2a   : > { %s937_s27 = scalar_lea.hbm %s1436_s2, 64 }
  0x2b   : > { %p938_p2 = scmp.ne.s32.totalorder %s1436_s2, %s937_s27  ;;  %p944_p10 = scmp.lt.u32.totalorder %s937_s27, %s1436_s2 }
  0x2d   : > { %p940_p1 = pnand %p938_p2, %p911_p13 }
  0x2f   : > { %p941_p6 = pneg %p940_p1 }
  0x31   : > { %p946_p3 = pnand %p944_p10, %p941_p6 }
  0x33   : > { %949 = shalt.err (!%p946_p3)
}
  0x34   : > { %s950_s25 = scalar_lea.vmem %s1197_s28, 64  ;;  %p958_p12 = scmp.lt.s32.totalorder %s1197_s28, %s1197_s28 }
  0x35   : > { %p951_p5 = scmp.ne.s32.totalorder %s1197_s28, %s950_s25  ;;  %p959_p0 = scmp.lt.s32.totalorder %s950_s25, %s950_s25 }
  0x37   : > { %p953_p7 = pnand %p951_p5, %p911_p13  ;;  %p960_p2 = por %p959_p0, %p958_p12 }
  0x39   : > { %p954_p9 = pneg %p953_p7 }
  0x3b   : > { %p961_p1 = pnand %p960_p2, %p954_p9 }
  0x3d   : > { %964 = shalt.err (!%p961_p1)
}
  0x3e   : > { %836 = dma.hbm_to_vmem [thread:$0]  (!%p1193_p11), %s1436_s2, 64, %s1197_s28, [#allocation6]  }
  0x3f   : > { %s1252_s9 = sadd.s32 1, %s1097_s18   ;;  %s32_s26 = sadd.s32 1, %s1093_s17 }
  0x40   : > { %s29_s10 = ssub.s32 %s1097_s18, %s1252_s9  ;;  %p39_p13 = scmp.ne.s32.totalorder %s1093_s17, %s1089_s16 }
  0x41   : > { %p30_p6 = scmp.eq.s32.totalorder %s29_s10, 0  ;;  %p40_p10 = scmp.eq.s32.totalorder %s1097_s18, 0 }
  0x42   : > { %p1446_p3 = scmp.eq.s32.totalorder %s1163_s19, 1  ;;  %p850_p7 = scmp.lt.s32.totalorder %s1097_s18, 2 }
  0x43   : > { %s1268_s12 = scalar_select %p30_p6, %s1093_s17, %s32_s26  }
  0x44   : > { %p1262_p5 = por %p1446_p3, %p39_p13  ;;  %p41_p9 = por %p40_p10, %p39_p13 }
  0x45   : > { %s187_s13 = sand.u32 1, %s1093_s17   ;;  %s781_s28 = sshll.u32 %s1097_s18, 7 }
  0x46   : > { %s1447_s11 = scalar_select %p1262_p5, 1, 0 }
  0x47   : > { %s780_s14 = sshll.u32 %s187_s13, 3  ;;  %s1275_s27 = scalar_lea.hbm %s1434_s0, %s781_s28 }
  0x48   : > { %s191_s29 = scalar_lea.vmem [#allocation2], %s780_s14  ;;  %p1279_p11 = pnand %p850_p7, %p41_p9 }
  0x49   : > { %s198_s30 = sshll.u32 %s191_s29, 4  ;;  %s188_s6 = scalar_lea.sflag [#allocation3], %s187_s13  ;;  %s1277_s30 = int_to_ptr.vmem [resolvable:$true] %s198_s30 }
  0x4a   : > { %s965_s25 = scalar_lea.hbm %s1275_s27, 128  ;;  %p967_p0 = pneg %p1279_p11 }
  0x4b   : > { %p966_p12 = scmp.ne.s32.totalorder %s1275_s27, %s965_s25  ;;  %s970_s26 = scalar_lea.hbm %s1434_s0, 256 }
  0x4c   : > { %p971_p13 = scmp.lt.u32.totalorder %s1275_s27, %s1434_s0  ;;  %p972_p6 = scmp.lt.u32.totalorder %s970_s26, %s965_s25 }
  0x4d   : > { %p968_p2 = pnand %p967_p0, %p966_p12  ;;  %p974_p3 = scmp.lt.u32.totalorder %s965_s25, %s1275_s27 }
  0x4e   : > { %p973_p10 = por %p972_p6, %p971_p13 }
  0x4f   : > { %p969_p1 = pneg %p968_p2 }
  0x50   : > { %p975_p7 = por %p974_p3, %p973_p10 }
  0x52   : > { %p976_p9 = pnand %p975_p7, %p969_p1 }
  0x54   : > { %979 = shalt.err (!%p976_p9)
}
  0x55   : > { %s980_s13 = scalar_lea.vmem %s1277_s30, 128  ;;  %s1103_s28 = smov [#allocation2]  }
  0x56   : > { %p981_p12 = scmp.ne.s32.totalorder %s1277_s30, %s980_s13  ;;  %s985_s20 = sshll.u32 %s1103_s28, 4  ;;  %s986_s20 = int_to_ptr.vmem [resolvable:$false] %s985_s20 }
  0x57   : > { %s987_s24 = scalar_lea.vmem %s986_s20, 256  ;;  %p988_p4 = scmp.lt.s32.totalorder %s1277_s30, %s986_s20 }
  0x58   : > { %p983_p2 = pnand %p981_p12, %p967_p0  ;;  %p989_p13 = scmp.lt.s32.totalorder %s987_s24, %s980_s13 }
  0x5a   : > { %p984_p5 = pneg %p983_p2  ;;  %p990_p6 = por %p989_p13, %p988_p4 }
  0x5c   : > { %p991_p10 = pnand %p990_p6, %p984_p5 }
  0x5e   : > { %994 = shalt.err (!%p991_p10)
}
  0x5f   : > { %840 = dma.hbm_to_vmem [thread:$0]  (!%p1279_p11), %s1275_s27, 128, %s1277_s30, %s188_s6  }
  0x60   : > { %207 = sbr.rel (%p1182_p8) target bundleno = 1044 (0x414), region = 32  ;;  %s1311_s29 = sand.u32 (!%p1182_p8), 1, %s1089_s16  }
  0x61   : > { %s783_s25 = sshll.u32 (!%p1182_p8), %s1311_s29, 3  ;;  %s210_s7 = scalar_lea.sflag (!%p1182_p8), [#allocation3], %s1311_s29 }
  0x62   : > { %s213_s8 = scalar_lea.vmem (!%p1182_p8), [#allocation2], %s783_s25  ;;  %p1449_p4 = scmp.ne.s32.totalorder (!%p1182_p8), %s1442_s21, 0 }
  0x67   : > { %1068 = dma.done.wait (%p1449_p4), %s210_s7, 128  }
  0x68   : > { %1070 = vsyncadd (%p1449_p4), %s210_s7, 4294967168  ;;  %p1450_p5 = scmp.eq.s32.totalorder %s1163_s19, 0 }
  0x6a   : > { %1072 = dma.done.wait (%p1450_p5), [#allocation6], 2112   ;;  %p1451_p11 = pmov %p1450_p5 }
  0x6b   : > { %v1104_v0 = vmov 0.0   ;;  %v251_v1 = vld [vmem:[#allocation5 + $0x8] sm:$0xff]  ;;  %v250_v3 = vld [vmem:[#allocation5] sm:$0xff]  ;;  %v249_v13 = vld [vmem:[%s213_s8] sm:$0xff]  ;;  %vm288_vm0 = vcmask 261120   ;;  %vm1105_vm1 = vmmov 0   ;;  %v268_v14 = vlaneseq }
  0x6c   : > { %1074 = vsyncadd (%p1451_p11), [#allocation6], 4294965184  ;;  %356 = vmatprep.mubr.f32.mxu0 %v1104_v0  ;;  %427 = vmatprep.mubr.f32.mxu1 %v1104_v0  ;;  %v255_v2 = vld [vmem:[#allocation5 + $0x28] sm:$0xff]  ;;  %v254_v5 = vld [vmem:[#allocation5 + $0x20] sm:$0xff]  ;;  %vm504_vm2 = vcmask 64512   ;;  %s1108_s21 = smov 8  }
  0x6d   : > { %v800_v4 = vpack.c.bf16 %v255_v2, %v251_v1  ;;  %v259_v6 = vld [vmem:[#allocation5 + $0x48] sm:$0xff]  ;;  %v802_v8 = vpack.c.bf16 %v254_v5, %v250_v3  ;;  %v258_v10 = vld [vmem:[#allocation5 + $0x40] sm:$0xff]  ;;  %v1328_v15 = vshrl.u32 %v268_v14, 7  ;;  %v253_v28 = vld [vmem:[#allocation5 + $0x18] sm:$0xff]  ;;  %v1106_v59 = vmov 1983009808  }
  0x6e   : > { %v263_v7 = vld [vmem:[#allocation5 + $0x68] sm:$0xff]  ;;  %v262_v11 = vld [vmem:[#allocation5 + $0x60] sm:$0xff]  ;;  %v257_v29 = vld [vmem:[#allocation5 + $0x38] sm:$0xff]  ;;  %v543_v60 = vunpack.c.l.s4 %v1106_v59  ;;  %v1107_v61 = vmov 1934713408   ;;  %s1109_s23 = smov 16  }
  0x6f   : > { %v804_v9 = vpack.c.bf16 %v263_v7, %v259_v6  ;;  %801 = vmatprep.subr.bf16.mxu0 %v800_v4  ;;  %v806_v12 = vpack.c.bf16 %v262_v11, %v258_v10  ;;  %v274_v16 = vsub.s32 1, %v1328_v15  ;;  %v266_v17 = vld [vmem:[#allocation7] sm:$0xf]  ;;  %v270_v18 = vsub.s32 0, %v1328_v15  ;;  %v252_v30 = vld [vmem:[#allocation5 + $0x10] sm:$0xff]  ;;  %v261_v33 = vld [vmem:[#allocation5 + $0x58] sm:$0xff] }
  0x70   : > { %803 = vmatpush1.bf16.msra.mxu0 %v802_v8  ;;  %v808_v31 = vpack.c.bf16 %v257_v29, %v253_v28  ;;  %v256_v32 = vld [vmem:[#allocation5 + $0x30] sm:$0xff]  ;;  %v265_v34 = vld [vmem:[#allocation5 + $0x78] sm:$0xff]  ;;  %v282_v45 = vsub.s32 3, %v1328_v15  ;;  %v278_v53 = vsub.s32 2, %v1328_v15  ;;  %v558_v62 = vunpack.c.l.s4 %v1107_v61  ;;  %s1110_s27 = smov 24   ;;  %s1111_s30 = smov 32  }
  0x71   : > { %805 = vmatprep.subr.bf16.mxu0 %v804_v9  ;;  %v275_v19 = vrot.slane %v266_v17, %v274_v16  ;;  %v271_v21 = vrot.slane %v266_v17, %v270_v18  ;;  %v810_v35 = vpack.c.bf16 %v256_v32, %v252_v30  ;;  %v812_v36 = vpack.c.bf16 %v265_v34, %v261_v33  ;;  %v260_v37 = vld [vmem:[#allocation5 + $0x50] sm:$0xff]  ;;  %s1112_s5 = smov 40   ;;  %s1113_s6 = smov 48  }
  0x72   : > { %v264_v38 = vld [vmem:[#allocation5 + $0x70] sm:$0xff]  ;;  %809 = vmatprep.subr.bf16.mxu1 %v808_v31  ;;  %v283_v46 = vrot.slane %v266_v17, %v282_v45  ;;  %v279_v54 = vrot.slane %v266_v17, %v278_v53  ;;  %v544_v63 = vunpack.c.0.s8 %v543_v60  ;;  %v559_v1 = vunpack.c.0.s8 %v558_v62  ;;  %s1114_s26 = smov 56   ;;  %s789_s10 = sshll.u32 %s1163_s19, 4 }
  0x73   : > { %811 = vmatpush1.bf16.msra.mxu1 %v810_v35  ;;  %v814_v39 = vpack.c.bf16 %v264_v38, %v260_v37  ;;  %vm619_vm3 = vcmask 130048   ;;  %vm621_vm4 = vcmask 195584   ;;  %s242_s14 = scalar_lea.vmem [#allocation8], %s1311_s29  ;;  %vm624_vm5 = vcmask 326656   ;;  %s248_s28 = scalar_lea.vmem [#allocation9], %s1311_s29 }
  0x74   : > { %807 = vmatpush1.bf16.msra.mxu0 %v806_v12  ;;  %813 = vmatprep.subr.bf16.mxu1 %v812_v36  ;;  %v547_v2 = vsub.s32 %v544_v63, %v1328_v15  ;;  %v562_v5 = vsub.s32 %v559_v1, %v1328_v15  ;;  %s649_s13 = sshll.u32 %s242_s14, 4  ;;  %s662_s20 = sshll.u32 %s248_s28, 4  ;;  %vm626_vm6 = vcmask 392192   ;;  %vm628_vm7 = vcmask 457728   ;;  %s1358_s13 = int_to_ptr.vmem [resolvable:$true] %s649_s13  ;;  %s1366_s20 = int_to_ptr.vmem [resolvable:$true] %s662_s20 }
  0x75   : > { %795 = vmatprep.subr.mxu0 %v1104_v0  ;;  %s1356_s7 = scalar_lea.hbm %s1437_s3, %s789_s10  ;;  %vm630_vm8 = vcmask 516096   ;;  %p1452_p0 = scmp.ne.s32.totalorder %s1447_s11, 0 }
  0x77   : > { %786 = vmatmul.mubr.msk.f32.vlgmr.msra.gmra.mrb[0].mxu0 %vm288_vm0, %v249_v13  ;;  %815 = vmatpush1.bf16.msra.mxu1 %v814_v39 }
  0x78   : > { %797 = vmatprep.mubr.msk.f32.mxu0 %vm1105_vm1, %v1104_v0 }
  0x7a   : > { %787 = vmatmul.mubr.msk.f32.vlgmr.msra.gmra.mrb[0].mxu1 %vm288_vm0, %v249_v13 }
 0x14a   : > { %v358_v20 = vpop.f32.mrb[0].mxu0 }
 0x14b   : > { %v360_v22 = vpop.f32.mrb[1].mxu0  ;;  %v359_v24 = vadd.f32 %v358_v20, %v271_v21 }
 0x14c   : > { %v361_v23 = vadd.f32 %v360_v22, %v275_v19 }
 0x14d   : > { %v429_v47 = vpop.f32.mrb[0].mxu1 }
 0x14e   : > { %796 = vmatpush3.xpose.msra.mxu0 %v361_v23  ;;  %v431_v48 = vpop.f32.mrb[1].mxu1  ;;  %v430_v55 = vadd.f32 %v429_v47, %v279_v54 }
 0x14f   : > { %v432_v49 = vadd.f32 %v431_v48, %v283_v46 }
 0x151   : > { %798 = vmatmul.mubr.f32.vlgmr.msra.gmra.mrb[2].mxu0 %v359_v24  ;;  %v788_v50 = vmul.f32 -1.442695, %v432_v49 }
 0x224   : > { %v500_v25 = vpop.f32.mrb[2].mxu0 }
 0x225   : > { %v799_v26 = vpop.f32.mrb[3].mxu0  ;;  %v505_v27 = vsel %vm504_vm2, %v500_v25, -inf }
 0x226   : > { %506 = vmax.xlane.f32.xlu0 %v505_v27 }
 0x2b3   : > { %v507_v40 = vpop.xlane.xlu0 %506 }
 0x2b4   : > { %v508_v41 = vsub.f32 %v500_v25, %v507_v40 }
 0x2b6   : > { %v509_v42 = vmul.f32 1.442695, %v508_v41 }
 0x2b8   : > { %901 = vpow2.f32 %v509_v42 }
 0x2b9   : > { %903 = vpow2.f32 %v788_v50 }
 0x2c2   : > { %v902_v43 = vpop.eup %901 }
 0x2c3   : > { %v511_v44 = vsel %vm504_vm2, %v902_v43, 0.0  ;;  %v904_v51 = vpop.eup %903 }
 0x2c4   : > { %512 = vadd.xlane.f32.xlu0 %v511_v44  ;;  %v519_v52 = vadd.f32 1.0, %v904_v51 }
 0x2c6   : > { %905 = vrcp.f32 %v519_v52 }
 0x2d0   : > { %v906_v56 = vpop.eup %905 }
 0x2d1   : > { %v522_v57 = vmul.f32 %v906_v56, %v430_v55 }
 0x351   : > { %v513_v58 = vpop.xlane.xlu0 %512 }
 0x352   : > { %907 = vrcp.f32 %v513_v58 }
 0x35c   : > { %v908_v3 = vpop.eup %907 }
 0x35d   : > { %v515_v4 = vmul.f32 %v908_v3, %v902_v43 }
 0x35f   : > { %v548_v6 = vrot.slane %v515_v4, %v547_v2  ;;  %v523_v7 = vsel %vm504_vm2, %v515_v4, 0.0  ;;  %v541_v15 = vcombine.high %v515_v4, %v1104_v0 }
 0x360   : > { %v524_v8 = vrot.slane %v523_v7, 4 }
 0x361   : > { %v563_v9 = vrot.slane %v548_v6, %v562_v5  ;;  %v556_v10 = vcombine.high %v548_v6, %v1104_v0  ;;  %v555_v20 = vrot.slane %v541_v15, %v547_v2 }
 0x362   : > { %v525_v11 = vadd.f32 %v524_v8, %v523_v7 }
 0x363   : > { %v586_v12 = vcombine.high %v563_v9, %v1104_v0  ;;  %v570_v13 = vrot.slane %v556_v10, %v562_v5  ;;  %v578_v21 = vrot.slane %v555_v20, %v562_v5  ;;  %v571_v23 = vcombine.high %v555_v20, %v1104_v0 }
 0x364   : > { %v526_v14 = vrot.slane %v525_v11, 2 }
 0x365   : > { %591 = vrot.lane.b32.xlu1 %v586_v12, %s1108_s21  ;;  %595 = vrot.lane.b32.xlu0 %v570_v13, %s1109_s23  ;;  %v587_v17 = vcombine.high %v570_v13, %v1104_v0  ;;  %v588_v22 = vcombine.high %v578_v21, %v1104_v0  ;;  %v585_v24 = vrot.slane %v571_v23, %v562_v5  ;;  %s1364_s21 = scalar_lea.hbm %s1438_s4, %s789_s10  ;;  %s633_s23 = scalar_lea.sflag [#allocation4], %s1311_s29 }
 0x366   : > { %v527_v16 = vadd.f32 %v526_v14, %v525_v11 }
 0x367   : > { %v589_v25 = vcombine.high %v585_v24, %v1104_v0 }
 0x368   : > { %v528_v18 = vrot.slane %v527_v16, 1 }
 0x369   : > { %599 = vrot.lane.b32.xlu1 %v587_v17, %s1110_s27  ;;  %s995_s27 = scalar_lea.vmem %s1358_s13, 16 }
 0x36a   : > { %v529_v19 = vadd.f32 %v528_v18, %v527_v16  ;;  %p996_p8 = scmp.ne.s32.totalorder %s1358_s13, %s995_s27 }
 0x36c   : > { %p997_p1 = pnand %p996_p8, %p1452_p0 }
 0x36d   : > { %531 = vbcast.lane.b32.xlu1 %v529_v19, 256 }
 0x36e   : > { %p998_p3 = pneg %p997_p1 }
 0x371   : > { %603 = vrot.lane.b32.xlu1 %v578_v21, %s1111_s30  ;;  %s1115_s30 = smov [#allocation8]  }
 0x375   : > { %607 = vrot.lane.b32.xlu1 %v588_v22, %s1112_s5  ;;  %s999_s5 = sshll.u32 %s1115_s30, 4  ;;  %s1000_s5 = int_to_ptr.vmem [resolvable:$false] %s999_s5 }
 0x376   : > { %p1002_p7 = scmp.lt.s32.totalorder %s1358_s13, %s1000_s5 }
 0x379   : > { %611 = vrot.lane.b32.xlu1 %v585_v24, %s1113_s6  ;;  %s1001_s6 = scalar_lea.vmem %s1000_s5, 32 }
 0x37a   : > { %p1003_p9 = scmp.lt.s32.totalorder %s1001_s6, %s995_s27 }
 0x37c   : > { %p1004_p12 = por %p1003_p9, %p1002_p7 }
 0x37d   : > { %615 = vrot.lane.b32.xlu1 %v589_v25, %s1114_s26 }
 0x37e   : > { %p1005_p2 = pnand %p1004_p12, %p998_p3 }
 0x3d7   : > { %v592_v26 = vpop.permute.xlu1 %591  ;;  %v596_v36 = vpop.permute.xlu0 %595 }
 0x3d8   : > { %v618_v35 = vsel %vm504_vm2, %v563_v9, %v592_v26 }
 0x3d9   : > { %v620_v38 = vsel %vm619_vm3, %v618_v35, %v596_v36 }
 0x3db   : > { %v600_v27 = vpop.permute.xlu1 %599 }
 0x3dc   : > { %v622_v40 = vsel %vm621_vm4, %v620_v38, %v600_v27 }
 0x3df   : > { %v532_v28 = vpop.permute.xlu1 %531 }
 0x3e0   : > { %v533_v29 = vmul.f32 %v532_v28, %v522_v57 }
 0x3e2   : > { %v534_v30 = vrot.slane %v533_v29, 4 }
 0x3e3   : > { %v604_v31 = vpop.permute.xlu1 %603 }
 0x3e4   : > { %v535_v32 = vadd.f32 %v534_v30, %v533_v29  ;;  %v623_v42 = vsel %vm288_vm0, %v622_v40, %v604_v31 }
 0x3e6   : > { %v536_v33 = vrot.slane %v535_v32, 2 }
 0x3e7   : > { %v608_v34 = vpop.permute.xlu1 %607 }
 0x3e8   : > { %v537_v0 = vadd.f32 %v536_v33, %v535_v32  ;;  %v625_v43 = vsel %vm624_vm5, %v623_v42, %v608_v34 }
 0x3ea   : > { %v538_v37 = vrot.slane %v537_v0, 1 }
 0x3eb   : > { %v612_v39 = vpop.permute.xlu1 %611 }
 0x3ec   : > { %v539_v41 = vadd.f32 %v538_v37, %v537_v0  ;;  %v627_v44 = vsel %vm626_vm6, %v625_v43, %v612_v39 }
 0x3ee   : > { %540 = vst [vmem:[%s242_s14] sm:$0x1] %v539_v41 }
 0x3ef   : > { %v616_v45 = vpop.permute.xlu1 %615 }
 0x3f0   : > { %1008 = shalt.err (!%p1005_p2)
}
 0x3f1   : > { %s1009_s26 = scalar_lea.hbm %s1356_s7, 16  ;;  %s1013_s24 = scalar_lea.hbm %s1437_s3, 32 }
 0x3f2   : > { %p1010_p13 = scmp.ne.s32.totalorder %s1356_s7, %s1009_s26  ;;  %p1014_p4 = scmp.lt.u32.totalorder %s1356_s7, %s1437_s3 }
 0x3f3   : > { %p1015_p5 = scmp.lt.u32.totalorder %s1013_s24, %s1009_s26  ;;  %p1017_p8 = scmp.lt.u32.totalorder %s1009_s26, %s1356_s7 }
 0x3f4   : > { %p1011_p6 = pnand %p1010_p13, %p1452_p0 }
 0x3f5   : > { %p1016_p11 = por %p1015_p5, %p1014_p4 }
 0x3f6   : > { %p1012_p10 = pneg %p1011_p6 }
 0x3f7   : > { %p1018_p1 = por %p1017_p8, %p1016_p11 }
 0x3f9   : > { %p1019_p3 = pnand %p1018_p1, %p1012_p10 }
 0x3fb   : > { %1022 = shalt.err (!%p1019_p3)
}
 0x3fc   : > { %826 = dma.vmem_to_hbm [thread:$0]  (%p1452_p0), %s1358_s13, 16, %s1356_s7, %s633_s23   ;;  %v629_v46 = vsel %vm628_vm7, %v627_v44, %v616_v45 }
 0x3fd   : > { %631 = vst.msk [vmem:[%s248_s28] sm:$0x1] %vm630_vm8, %v629_v46  ;;  %s637_s8 = scalar_lea.sflag [#allocation10], %s1311_s29  ;;  %s1023_s27 = scalar_lea.vmem %s1366_s20, 16 }
 0x3fe   : > { %p1024_p7 = scmp.ne.s32.totalorder %s1366_s20, %s1023_s27  ;;  %s1116_s30 = smov [#allocation9]  }
 0x3ff   : > { %s1027_s5 = sshll.u32 %s1116_s30, 4  ;;  %s1028_s5 = int_to_ptr.vmem [resolvable:$false] %s1027_s5 }
 0x400   : > { %p1025_p9 = pnand %p1024_p7, %p1452_p0  ;;  %s1029_s6 = scalar_lea.vmem %s1028_s5, 32 }
 0x401   : > { %p1030_p2 = scmp.lt.s32.totalorder %s1366_s20, %s1028_s5  ;;  %p1031_p13 = scmp.lt.s32.totalorder %s1029_s6, %s1023_s27 }
 0x402   : > { %p1026_p12 = pneg %p1025_p9 }
 0x403   : > { %p1032_p6 = por %p1031_p13, %p1030_p2 }
 0x405   : > { %p1033_p10 = pnand %p1032_p6, %p1026_p12 }
 0x407   : > { %1036 = shalt.err (!%p1033_p10)
}
 0x408   : > { %s1037_s29 = scalar_lea.hbm %s1364_s21, 16  ;;  %s1041_s7 = scalar_lea.hbm %s1438_s4, 32 }
 0x409   : > { %p1038_p4 = scmp.ne.s32.totalorder %s1364_s21, %s1037_s29  ;;  %p1042_p8 = scmp.lt.u32.totalorder %s1364_s21, %s1438_s4 }
 0x40a   : > { %p1043_p1 = scmp.lt.u32.totalorder %s1041_s7, %s1037_s29  ;;  %p1045_p7 = scmp.lt.u32.totalorder %s1037_s29, %s1364_s21 }
 0x40b   : > { %p1039_p5 = pnand %p1038_p4, %p1452_p0 }
 0x40c   : > { %p1044_p3 = por %p1043_p1, %p1042_p8 }
 0x40d   : > { %p1040_p11 = pneg %p1039_p5 }
 0x40e   : > { %p1046_p9 = por %p1045_p7, %p1044_p3 }
 0x410   : > { %p1047_p12 = pnand %p1046_p9, %p1040_p11 }
 0x412   : > { %1050 = shalt.err (!%p1047_p12)
}
 0x413   : > { %827 = dma.vmem_to_hbm [thread:$0]  (%p1452_p0), %s1366_s20, 16, %s1364_s21, %s637_s8  }
 0x414 PF: > { %s674_s10 = sand.u32 1, %s1085_s15   ;;  %p1453_p2 = scmp.ne.s32.totalorder %s1443_s22, 0 }
 0x415   : > { %p1454_p13 = scmp.ge.s32.totalorder %s1097_s18, 2  ;;  %s675_s14 = scalar_lea.sflag [#allocation4], %s674_s10 }
 0x417   : > { %p842_p6 = pnand %p1454_p13, %p1453_p2 }
 0x419   : > { %1076 = dma.done.wait (!%p842_p6), %s675_s14, 16  }
 0x41a   : > { %1078 = vsyncadd (!%p842_p6), %s675_s14, 4294967280  ;;  %s683_s24 = scalar_lea.sflag [#allocation10], %s674_s10 }
 0x41b   : > { %1080 = dma.done.wait (!%p842_p6), %s683_s24, 16  }
 0x41c   : > { %1082 = vsyncadd (!%p842_p6), %s683_s24, 4294967280  ;;  %p22_p0 = scmp.ge.s32.totalorder %s1252_s9, 4   ;;  %s1455_s15 = smov %s1089_s16 }
 0x41d   : > { %s1456_s16 = smov %s1093_s17  ;;  %s1457_s17 = smov %s1268_s12 }
 0x41e   : > { %s1458_s18 = smov %s1252_s9  ;;  %24 = sbr.rel (!%p22_p0) target bundleno = 8 (0x8), region = 102 }
 0x425   :  { %687 = vsyncpa [#allocation3], 1 }
 0x426   :  { %689 = vsyncpa [#allocation3 + $0x1], 1 }
 0x427   :  { %690 = vsyncpa [#allocation6], 1 }
 0x428   :  { %691 = vsyncpa [#allocation4], 1 }
 0x429   :  { %693 = vsyncpa [#allocation4 + $0x1], 1 }
 0x42a   :  { %694 = vsyncpa [#allocation10], 1 }
 0x42b   :  { %696 = vsyncpa [#allocation10 + $0x1], 1 }

</bundles_post_ra>
